<compile_context>
chip_gen: v7x
topology: tpu7x:2x2x1
jax: 0.10.0
libtpu: 0.0.40
codegen_flags: <defaults>
</compile_context>

<pallas_src>
import functools

import jax
import jax.numpy as jnp
from jax import lax
from jax.experimental import pallas as pl
from jax.experimental.pallas import tpu as pltpu


def _round_up(v, m):
    return (v + m - 1) // m * m


def _proxy_anchor_kernel(x_ref, p_ref, t_ref,
                         pos_out, neg_out, nv_out,
                         xn_ref, pos_acc, neg_acc, nvalid_acc,
                         *, mrg, alpha, nb_classes, batch, tc, n_inner):
    s = pl.program_id(0)   # class super-block (parallel / megacore axis)
    j = pl.program_id(1)   # class tile within the super-block (arbitrary axis)

    @pl.when(j == 0)
    def _init():
        # Hoisted X normalization: once per super-block (per core), not per tile.
        x = x_ref[...].astype(jnp.float32)
        xn_ref[...] = x * lax.rsqrt(jnp.sum(x * x, axis=-1, keepdims=True) + 1e-12)
        pos_acc[...] = jnp.zeros_like(pos_acc)
        neg_acc[...] = jnp.zeros_like(neg_acc)
        nvalid_acc[...] = jnp.zeros_like(nvalid_acc)

    x_n = xn_ref[...]                                   # (Bp, Dp) f32, normalized
    p = p_ref[...].astype(jnp.float32)                  # (TC, Dp)
    t = t_ref[...]                                      # (Bp, 1) int32 (padded rows = -1)
    bp = x_n.shape[0]

    # l2 normalization of the streamed proxy tile (eps inside the sqrt,
    # matching the torch l2_norm helper; zero D-padding does not change sums).
    p_n = p * lax.rsqrt(jnp.sum(p * p, axis=-1, keepdims=True) + 1e-12)

    # Cosine similarities for this class tile: contract the last dim of both
    # operands directly on the MXU (no transposed copy of P).
    cos = lax.dot_general(x_n, p_n,
                          dimension_numbers=(((1,), (1,)), ((), ())),
                          preferred_element_type=jnp.float32)       # (Bp, TC)

    tile_off = (s * n_inner + j) * tc                   # scalar int32
    base_iota = lax.broadcasted_iota(jnp.int32, (bp, tc), 1)
    eq = (t - tile_off) == base_iota                    # (Bp, TC)
    row_valid = lax.broadcasted_iota(jnp.int32, (bp, 1), 0) < batch
    p_one_hot = (eq & row_valid).astype(jnp.float32)
    n_one_hot = (jnp.logical_not(eq) & row_valid).astype(jnp.float32)
    class_valid = (lax.broadcasted_iota(jnp.int32, (1, tc), 1)
                   < (nb_classes - tile_off)).astype(jnp.float32)   # (1, TC)

    # --- Positive term: gather each row's own-class cosine (exact: <=1 match
    #     per row per tile), exp on a (Bp, 1) column only, scatter per class.
    pos_cos = jnp.sum(p_one_hot * cos, axis=1, keepdims=True)       # (Bp, 1)
    pos_exp = jnp.exp(-alpha * (pos_cos - mrg))                     # (Bp, 1)
    p_sim_sum = jnp.sum(p_one_hot * pos_exp, axis=0, keepdims=True)  # (1, TC)

    # --- Negative term: full (Bp, TC) exp, masked reduction over the batch.
    neg_exp = jnp.exp(alpha * (cos + mrg))
    n_sim_sum = jnp.sum(n_one_hot * neg_exp, axis=0, keepdims=True)  # (1, TC)

    pos_count = jnp.sum(p_one_hot, axis=0, keepdims=True)           # (1, TC)

    # Partial scalar accumulators for this super-block (kept as (1,1) vregs).
    pos_acc[...] += jnp.sum(jnp.log(1.0 + p_sim_sum), axis=1, keepdims=True)
    neg_acc[...] += jnp.sum(class_valid * jnp.log(1.0 + n_sim_sum),
                            axis=1, keepdims=True)
    nvalid_acc[...] += jnp.sum((pos_count > 0.5).astype(jnp.float32),
                               axis=1, keepdims=True)

    @pl.when(j == n_inner - 1)
    def _finalize():
        # Splat each partial across a lane-dense (8, 128) tile for the writeback.
        pos_out[...] = jnp.broadcast_to(pos_acc[...], (8, 128))
        neg_out[...] = jnp.broadcast_to(neg_acc[...], (8, 128))
        nv_out[...] = jnp.broadcast_to(nvalid_acc[...], (8, 128))


def proxy_anchor_loss(x, proxies, t, *, mrg=0.1, alpha=32.0, tile_classes=None,
                      n_super=2):
    """x: (B, D) f32, proxies: (C, D) f32, t: (B,) int labels -> scalar f32."""
    b, d = x.shape
    c, d2 = proxies.shape
    assert d == d2

    d_pad = _round_up(d, 128)
    b_pad = _round_up(b, 8)

    # --- Per-generation VMEM budget: ~60% of physical capacity.
    try:
        vmem_cap = int(pltpu.get_tpu_info().vmem_capacity_bytes)
    except Exception:
        vmem_cap = 64 << 20      # conservative fallback (v7x per-core VMEM)
    budget = int(0.6 * vmem_cap)
    slack_bytes = 6 << 20        # headroom for compiler/runtime internal scratch

    # --- Class tile size from the budget: biggest 128-multiple that fits the
    #     double-buffered P tile + resident X + x_n scratch + (Bp,TC) temps.
    resident_words = 3 * b_pad * d_pad                  # X (2 bufs) + x_n scratch
    avail_words = (budget - slack_bytes) // 4 - resident_words
    denom = 2 * d_pad + 12 * b_pad                      # P double-buffer + temporaries
    tc = max(avail_words // max(denom, 1), 128)
    tc = min(int(tc), _round_up(c, 128))
    if tile_classes is not None:
        tc = min(tc, int(tile_classes))
    tc = max((tc // 128) * 128, 128)

    n_super = max(1, int(n_super))
    tiles_total = -(-c // tc)
    n_inner = -(-tiles_total // n_super)
    c_pad = n_super * n_inner * tc

    x_p = jnp.pad(x.astype(jnp.float32), ((0, b_pad - b), (0, d_pad - d)))
    p_p = jnp.pad(proxies.astype(jnp.float32), ((0, c_pad - c), (0, d_pad - d)))
    t_p = jnp.pad(t.astype(jnp.int32), (0, b_pad - b),
                  constant_values=-1).reshape(-1, 1)

    kernel = functools.partial(
        _proxy_anchor_kernel, mrg=float(mrg), alpha=float(alpha),
        nb_classes=int(c), batch=int(b), tc=int(tc), n_inner=int(n_inner))

    footprint = 4 * (resident_words + 2 * tc * d_pad + 12 * b_pad * tc) + slack_bytes
    vmem_limit = int(min(max(footprint, 16 << 20), budget))

    out_tile = jax.ShapeDtypeStruct((n_super * 8, 128), jnp.float32)
    out_spec = lambda: pl.BlockSpec((8, 128), lambda s, j: (s, 0))

    pos_p, neg_p, nv_p = pl.pallas_call(
        kernel,
        out_shape=(out_tile, out_tile, out_tile),
        grid_spec=pltpu.PrefetchScalarGridSpec(
            num_scalar_prefetch=0,
            grid=(n_super, n_inner),
            in_specs=[
                pl.BlockSpec((b_pad, d_pad), lambda s, j: (0, 0)),             # X (resident)
                pl.BlockSpec((tc, d_pad), lambda s, j: (s * n_inner + j, 0)),  # P (streamed)
                pl.BlockSpec((b_pad, 1), lambda s, j: (0, 0)),                 # labels
            ],
            out_specs=(out_spec(), out_spec(), out_spec()),
            scratch_shapes=[
                pltpu.VMEM((b_pad, d_pad), jnp.float32),   # hoisted x_n
                pltpu.VMEM((1, 1), jnp.float32),           # pos partial
                pltpu.VMEM((1, 1), jnp.float32),           # neg partial
                pltpu.VMEM((1, 1), jnp.float32),           # nvalid partial
            ],
        ),
        compiler_params=pltpu.CompilerParams(
            dimension_semantics=("parallel", "arbitrary"),
            vmem_limit_bytes=vmem_limit),
    )(x_p, p_p, t_p)

    pos_total = jnp.sum(pos_p.reshape(n_super, 8, 128)[:, 0, 0])
    neg_total = jnp.sum(neg_p.reshape(n_super, 8, 128)[:, 0, 0])
    num_valid = jnp.sum(nv_p.reshape(n_super, 8, 128)[:, 0, 0])
    # num_valid >= 1 because every real batch row carries a label in [0, C).
    return pos_total / num_valid + neg_total / float(c)


def _reference_loss(x, proxies, t, mrg=0.1, alpha=32.0):
    nb_classes = proxies.shape[0]
    x_n = x / jnp.sqrt(jnp.sum(x * x, axis=-1, keepdims=True) + 1e-12)
    p_n = proxies / jnp.sqrt(jnp.sum(proxies * proxies, axis=-1, keepdims=True) + 1e-12)
    cos = x_n @ p_n.T
    p_one_hot = jax.nn.one_hot(t, nb_classes, dtype=jnp.float32)
    n_one_hot = 1.0 - p_one_hot
    pos_exp = jnp.exp(-alpha * (cos - mrg))
    neg_exp = jnp.exp(alpha * (cos + mrg))
    p_sim_sum = jnp.sum(p_one_hot * pos_exp, axis=0)
    n_sim_sum = jnp.sum(n_one_hot * neg_exp, axis=0)
    num_valid = jnp.sum((jnp.sum(p_one_hot, axis=0) > 0.5).astype(jnp.float32))
    pos_term = jnp.sum(jnp.log(1.0 + p_sim_sum)) / num_valid
    neg_term = jnp.sum(jnp.log(1.0 + n_sim_sum)) / nb_classes
    return pos_term + neg_term


if __name__ == "__main__":
    key = jax.random.PRNGKey(0)

    # Case 1: toy shapes (single class tile, one super-block fully padded).
    nb_classes, sz_embed, batch = 16, 32, 8
    kx, kp, kt, key = jax.random.split(key, 4)
    x = jax.random.normal(kx, (batch, sz_embed), dtype=jnp.float32)
    proxies = jax.random.normal(kp, (nb_classes, sz_embed), dtype=jnp.float32) * jnp.sqrt(
        2.0 / nb_classes)  # kaiming_normal_(mode='fan_out') on (C, D) -> std sqrt(2/C)
    t = jax.random.randint(kt, (batch,), 0, nb_classes, dtype=jnp.int32)

    loss = proxy_anchor_loss(x, proxies, t, mrg=0.1, alpha=32.0)
    jax.block_until_ready(loss)
    ref = _reference_loss(x, proxies, t, mrg=0.1, alpha=32.0)
    assert jnp.allclose(loss, ref, rtol=1e-4, atol=1e-4), (loss, ref)

    # Case 2: non-aligned shapes with several class tiles across both grid axes
    # (exercises class/batch/embed padding, the 2-D grid and partial outputs).
    nb_classes2, sz_embed2, batch2 = 300, 24, 10
    kx, kp, kt, key = jax.random.split(key, 4)
    x2 = jax.random.normal(kx, (batch2, sz_embed2), dtype=jnp.float32)
    proxies2 = jax.random.normal(kp, (nb_classes2, sz_embed2), dtype=jnp.float32) * jnp.sqrt(
        2.0 / nb_classes2)
    t2 = jax.random.randint(kt, (batch2,), 0, nb_classes2, dtype=jnp.int32)

    loss2 = proxy_anchor_loss(x2, proxies2, t2, mrg=0.1, alpha=32.0,
                              tile_classes=128)   # grid = (2, 2)
    jax.block_until_ready(loss2)
    ref2 = _reference_loss(x2, proxies2, t2, mrg=0.1, alpha=32.0)
    assert jnp.allclose(loss2, ref2, rtol=1e-4, atol=1e-4), (loss2, ref2)

    # Case 3: auto tile selection from the VMEM budget (tile_classes=None).
    loss3 = proxy_anchor_loss(x2, proxies2, t2, mrg=0.1, alpha=32.0)
    jax.block_until_ready(loss3)
    assert jnp.allclose(loss3, ref2, rtol=1e-4, atol=1e-4), (loss3, ref2)

    print("KERNEL_OK")
</pallas_src>

<mosaic_0001>
module attributes {stable_mosaic.version = 11 : i64} {
  func.func @_proxy_anchor_kernel(%arg0: i32, %arg1: i32, %arg2: memref<8x128xf32, #tpu.memory_space<vmem>>, %arg3: memref<128x128xf32, #tpu.memory_space<vmem>>, %arg4: memref<8x1xi32, #tpu.memory_space<vmem>>, %arg5: memref<8x128xf32, #tpu.memory_space<vmem>>, %arg6: memref<8x128xf32, #tpu.memory_space<vmem>>, %arg7: memref<8x128xf32, #tpu.memory_space<vmem>>, %arg8: memref<8x128xf32, #tpu.memory_space<vmem>>, %arg9: memref<1x1xf32, #tpu.memory_space<vmem>>, %arg10: memref<1x1xf32, #tpu.memory_space<vmem>>, %arg11: memref<1x1xf32, #tpu.memory_space<vmem>>) attributes {dimension_semantics = [#tpu.dimension_semantics<parallel>, #tpu.dimension_semantics<arbitrary>], iteration_bounds = array<i64: 2, 1>, scalar_prefetch = 0 : i64, scratch_operands = 4 : i64, tpu.core_type = #tpu.core_type<tc>, window_params = [{pipeline_mode = #tpu.pipeline_mode<synchronous>, transform_indices = @transform_0, window_bounds = array<i64: 8, 128>}, {transform_indices = @transform_1, window_bounds = array<i64: 128, 128>}, {pipeline_mode = #tpu.pipeline_mode<synchronous>, transform_indices = @transform_2, window_bounds = array<i64: 8, 1>}, {transform_indices = @transform_3, window_bounds = array<i64: 8, 128>}, {transform_indices = @transform_4, window_bounds = array<i64: 8, 128>}, {transform_indices = @transform_5, window_bounds = array<i64: 8, 128>}]} {
    %c0_i32 = arith.constant 0 : i32
    %0 = arith.cmpi eq, %arg1, %c0_i32 : i32
    %1 = arith.extui %0 : i1 to i32
    %c0_i32_0 = arith.constant 0 : i32
    %2 = arith.cmpi ne, %1, %c0_i32_0 : i32
    scf.if %2 {
      %c0_37 = arith.constant 0 : index
      %c0_38 = arith.constant 0 : index
      %92 = vector.load %arg2[%c0_37, %c0_38] : memref<8x128xf32, #tpu.memory_space<vmem>>, vector<8x128xf32>
      %93 = arith.mulf %92, %92 : vector<8x128xf32>
      %cst_39 = arith.constant dense<0.000000e+00> : vector<8xf32>
      %94 = vector.multi_reduction <add>, %93, %cst_39 [1] : vector<8x128xf32> to vector<8xf32>
      %95 = vector.shape_cast %94 : vector<8xf32> to vector<8x1xf32>
      %cst_40 = arith.constant 9.99999996E-13 : f32
      %96 = vector.broadcast %cst_40 : f32 to vector<8x1xf32>
      %97 = arith.addf %95, %96 : vector<8x1xf32>
      %98 = math.rsqrt %97 : vector<8x1xf32>
      %99 = vector.broadcast %98 : vector<8x1xf32> to vector<8x128xf32>
      %100 = arith.mulf %92, %99 : vector<8x128xf32>
      %c0_41 = arith.constant 0 : index
      %c0_42 = arith.constant 0 : index
      %101 = vector.load %arg8[%c0_41, %c0_42] : memref<8x128xf32, #tpu.memory_space<vmem>>, vector<8x128xf32>
      tpu.vector_store %arg8[%c0_41, %c0_42], %100 {strides = array<i32>} : memref<8x128xf32, #tpu.memory_space<vmem>>, vector<8x128xf32>,
      %cst_43 = arith.constant 0.000000e+00 : f32
      %102 = vector.broadcast %cst_43 : f32 to vector<1x1xf32>
      %c0_44 = arith.constant 0 : index
      %c0_45 = arith.constant 0 : index
      %103 = vector.load %arg9[%c0_44, %c0_45] : memref<1x1xf32, #tpu.memory_space<vmem>>, vector<1x1xf32>
      tpu.vector_store %arg9[%c0_44, %c0_45], %102 {strides = array<i32>} : memref<1x1xf32, #tpu.memory_space<vmem>>, vector<1x1xf32>,
      %cst_46 = arith.constant 0.000000e+00 : f32
      %104 = vector.broadcast %cst_46 : f32 to vector<1x1xf32>
      %c0_47 = arith.constant 0 : index
      %c0_48 = arith.constant 0 : index
      %105 = vector.load %arg10[%c0_47, %c0_48] : memref<1x1xf32, #tpu.memory_space<vmem>>, vector<1x1xf32>
      tpu.vector_store %arg10[%c0_47, %c0_48], %104 {strides = array<i32>} : memref<1x1xf32, #tpu.memory_space<vmem>>, vector<1x1xf32>,
      %cst_49 = arith.constant 0.000000e+00 : f32
      %106 = vector.broadcast %cst_49 : f32 to vector<1x1xf32>
      %c0_50 = arith.constant 0 : index
      %c0_51 = arith.constant 0 : index
      %107 = vector.load %arg11[%c0_50, %c0_51] : memref<1x1xf32, #tpu.memory_space<vmem>>, vector<1x1xf32>
      tpu.vector_store %arg11[%c0_50, %c0_51], %106 {strides = array<i32>} : memref<1x1xf32, #tpu.memory_space<vmem>>, vector<1x1xf32>,
    } else {
    }
    %c0 = arith.constant 0 : index
    %c0_1 = arith.constant 0 : index
    %3 = vector.load %arg8[%c0, %c0_1] : memref<8x128xf32, #tpu.memory_space<vmem>>, vector<8x128xf32>
    %c0_2 = arith.constant 0 : index
    %c0_3 = arith.constant 0 : index
    %4 = vector.load %arg3[%c0_2, %c0_3] : memref<128x128xf32, #tpu.memory_space<vmem>>, vector<128x128xf32>
    %c0_4 = arith.constant 0 : index
    %c0_5 = arith.constant 0 : index
    %5 = vector.load %arg4[%c0_4, %c0_5] : memref<8x1xi32, #tpu.memory_space<vmem>>, vector<8x1xi32>
    %6 = arith.mulf %4, %4 : vector<128x128xf32>
    %cst = arith.constant dense<0.000000e+00> : vector<128xf32>
    %7 = vector.multi_reduction <add>, %6, %cst [1] : vector<128x128xf32> to vector<128xf32>
    %8 = vector.shape_cast %7 : vector<128xf32> to vector<128x1xf32>
    %cst_6 = arith.constant 9.99999996E-13 : f32
    %9 = vector.broadcast %cst_6 : f32 to vector<128x1xf32>
    %10 = arith.addf %8, %9 : vector<128x1xf32>
    %11 = math.rsqrt %10 : vector<128x1xf32>
    %12 = vector.broadcast %11 : vector<128x1xf32> to vector<128x128xf32>
    %13 = arith.mulf %4, %12 : vector<128x128xf32>
    %cst_7 = arith.constant dense<0.000000e+00> : vector<8x128xf32>
    %14 = tpu.matmul %3, %13, %cst_7 {dimension_numbers = #tpu.dot_dimension_numbers<[1], [1], [0], [0], [0, 0, 1, 0], [], []>} : vector<8x128xf32>, vector<128x128xf32>, vector<8x128xf32> -> vector<8x128xf32>
    %c1_i32 = arith.constant 1 : i32
    %15 = arith.muli %arg0, %c1_i32 : i32
    %16 = arith.addi %15, %arg1 : i32
    %c128_i32 = arith.constant 128 : i32
    %17 = arith.muli %16, %c128_i32 : i32
    %18 = tpu.iota {dimensions = array<i32: 1>} : vector<8x128xi32>
    %19 = vector.broadcast %17 : i32 to vector<8x1xi32>
    %20 = arith.subi %5, %19 : vector<8x1xi32>
    %21 = vector.broadcast %20 : vector<8x1xi32> to vector<8x128xi32>
    %22 = arith.cmpi eq, %21, %18 : vector<8x128xi32>
    %23 = tpu.iota {dimensions = array<i32: 0>} : vector<8x1xi32>
    %c8_i32 = arith.constant 8 : i32
    %24 = vector.broadcast %c8_i32 : i32 to vector<8x1xi32>
    %25 = arith.cmpi slt, %23, %24 : vector<8x1xi32>
    %26 = vector.broadcast %25 : vector<8x1xi1> to vector<8x128xi1>
    %27 = arith.andi %22, %26 : vector<8x128xi1>
    %28 = arith.extui %27 : vector<8x128xi1> to vector<8x128xi32>
    %29 = arith.sitofp %28 : vector<8x128xi32> to vector<8x128xf32>
    %cst_8 = arith.constant dense<true> : vector<8x128xi1>
    %30 = arith.xori %22, %cst_8 : vector<8x128xi1>
    %31 = vector.broadcast %25 : vector<8x1xi1> to vector<8x128xi1>
    %32 = arith.andi %30, %31 : vector<8x128xi1>
    %33 = arith.extui %32 : vector<8x128xi1> to vector<8x128xi32>
    %34 = arith.sitofp %33 : vector<8x128xi32> to vector<8x128xf32>
    %35 = tpu.iota {dimensions = array<i32: 1>} : vector<1x128xi32>
    %c16_i32 = arith.constant 16 : i32
    %36 = arith.subi %c16_i32, %17 : i32
    %37 = vector.broadcast %36 : i32 to vector<1x128xi32>
    %38 = arith.cmpi slt, %35, %37 : vector<1x128xi32>
    %39 = arith.extui %38 : vector<1x128xi1> to vector<1x128xi32>
    %40 = arith.sitofp %39 : vector<1x128xi32> to vector<1x128xf32>
    %41 = arith.mulf %29, %14 : vector<8x128xf32>
    %cst_9 = arith.constant dense<0.000000e+00> : vector<8xf32>
    %42 = vector.multi_reduction <add>, %41, %cst_9 [1] : vector<8x128xf32> to vector<8xf32>
    %43 = vector.shape_cast %42 : vector<8xf32> to vector<8x1xf32>
    %cst_10 = arith.constant 1.000000e-01 : f32
    %44 = vector.broadcast %cst_10 : f32 to vector<8x1xf32>
    %45 = arith.subf %43, %44 : vector<8x1xf32>
    %cst_11 = arith.constant -3.200000e+01 : f32
    %46 = vector.broadcast %cst_11 : f32 to vector<8x1xf32>
    %47 = arith.mulf %46, %45 : vector<8x1xf32>
    %48 = math.exp %47 : vector<8x1xf32>
    %49 = vector.broadcast %48 : vector<8x1xf32> to vector<8x128xf32>
    %50 = arith.mulf %29, %49 : vector<8x128xf32>
    %cst_12 = arith.constant dense<0.000000e+00> : vector<128xf32>
    %51 = vector.multi_reduction <add>, %50, %cst_12 [0] : vector<8x128xf32> to vector<128xf32>
    %52 = vector.shape_cast %51 : vector<128xf32> to vector<1x128xf32>
    %cst_13 = arith.constant 1.000000e-01 : f32
    %53 = vector.broadcast %cst_13 : f32 to vector<8x128xf32>
    %54 = arith.addf %14, %53 : vector<8x128xf32>
    %cst_14 = arith.constant 3.200000e+01 : f32
    %55 = vector.broadcast %cst_14 : f32 to vector<8x128xf32>
    %56 = arith.mulf %55, %54 : vector<8x128xf32>
    %57 = math.exp %56 : vector<8x128xf32>
    %58 = arith.mulf %34, %57 : vector<8x128xf32>
    %cst_15 = arith.constant dense<0.000000e+00> : vector<128xf32>
    %59 = vector.multi_reduction <add>, %58, %cst_15 [0] : vector<8x128xf32> to vector<128xf32>
    %60 = vector.shape_cast %59 : vector<128xf32> to vector<1x128xf32>
    %cst_16 = arith.constant dense<0.000000e+00> : vector<128xf32>
    %61 = vector.multi_reduction <add>, %29, %cst_16 [0] : vector<8x128xf32> to vector<128xf32>
    %62 = vector.shape_cast %61 : vector<128xf32> to vector<1x128xf32>
    %c0_17 = arith.constant 0 : index
    %c0_18 = arith.constant 0 : index
    %63 = vector.load %arg9[%c0_17, %c0_18] : memref<1x1xf32, #tpu.memory_space<vmem>>, vector<1x1xf32>
    %cst_19 = arith.constant 1.000000e+00 : f32
    %64 = vector.broadcast %cst_19 : f32 to vector<1x128xf32>
    %65 = arith.addf %64, %52 : vector<1x128xf32>
    %66 = math.log %65 : vector<1x128xf32>
    %cst_20 = arith.constant dense<0.000000e+00> : vector<1xf32>
    %67 = vector.multi_reduction <add>, %66, %cst_20 [1] : vector<1x128xf32> to vector<1xf32>
    %68 = vector.shape_cast %67 : vector<1xf32> to vector<1x1xf32>
    %69 = arith.addf %63, %68 : vector<1x1xf32>
    %c0_21 = arith.constant 0 : index
    %c0_22 = arith.constant 0 : index
    %70 = vector.load %arg9[%c0_21, %c0_22] : memref<1x1xf32, #tpu.memory_space<vmem>>, vector<1x1xf32>
    tpu.vector_store %arg9[%c0_21, %c0_22], %69 {strides = array<i32>} : memref<1x1xf32, #tpu.memory_space<vmem>>, vector<1x1xf32>,
    %c0_23 = arith.constant 0 : index
    %c0_24 = arith.constant 0 : index
    %71 = vector.load %arg10[%c0_23, %c0_24] : memref<1x1xf32, #tpu.memory_space<vmem>>, vector<1x1xf32>
    %cst_25 = arith.constant 1.000000e+00 : f32
    %72 = vector.broadcast %cst_25 : f32 to vector<1x128xf32>
    %73 = arith.addf %72, %60 : vector<1x128xf32>
    %74 = math.log %73 : vector<1x128xf32>
    %75 = arith.mulf %40, %74 : vector<1x128xf32>
    %cst_26 = arith.constant dense<0.000000e+00> : vector<1xf32>
    %76 = vector.multi_reduction <add>, %75, %cst_26 [1] : vector<1x128xf32> to vector<1xf32>
    %77 = vector.shape_cast %76 : vector<1xf32> to vector<1x1xf32>
    %78 = arith.addf %71, %77 : vector<1x1xf32>
    %c0_27 = arith.constant 0 : index
    %c0_28 = arith.constant 0 : index
    %79 = vector.load %arg10[%c0_27, %c0_28] : memref<1x1xf32, #tpu.memory_space<vmem>>, vector<1x1xf32>
    tpu.vector_store %arg10[%c0_27, %c0_28], %78 {strides = array<i32>} : memref<1x1xf32, #tpu.memory_space<vmem>>, vector<1x1xf32>,
    %c0_29 = arith.constant 0 : index
    %c0_30 = arith.constant 0 : index
    %80 = vector.load %arg11[%c0_29, %c0_30] : memref<1x1xf32, #tpu.memory_space<vmem>>, vector<1x1xf32>
    %cst_31 = arith.constant 5.000000e-01 : f32
    %81 = vector.broadcast %cst_31 : f32 to vector<1x128xf32>
    %82 = arith.cmpf ogt, %62, %81 : vector<1x128xf32>
    %83 = arith.extui %82 : vector<1x128xi1> to vector<1x128xi32>
    %84 = arith.sitofp %83 : vector<1x128xi32> to vector<1x128xf32>
    %cst_32 = arith.constant dense<0.000000e+00> : vector<1xf32>
    %85 = vector.multi_reduction <add>, %84, %cst_32 [1] : vector<1x128xf32> to vector<1xf32>
    %86 = vector.shape_cast %85 : vector<1xf32> to vector<1x1xf32>
    %87 = arith.addf %80, %86 : vector<1x1xf32>
    %c0_33 = arith.constant 0 : index
    %c0_34 = arith.constant 0 : index
    %88 = vector.load %arg11[%c0_33, %c0_34] : memref<1x1xf32, #tpu.memory_space<vmem>>, vector<1x1xf32>
    tpu.vector_store %arg11[%c0_33, %c0_34], %87 {strides = array<i32>} : memref<1x1xf32, #tpu.memory_space<vmem>>, vector<1x1xf32>,
    %c0_i32_35 = arith.constant 0 : i32
    %89 = arith.cmpi eq, %arg1, %c0_i32_35 : i32
    %90 = arith.extui %89 : i1 to i32
    %c0_i32_36 = arith.constant 0 : i32
    %91 = arith.cmpi ne, %90, %c0_i32_36 : i32
    scf.if %91 {
      %c0_37 = arith.constant 0 : index
      %c0_38 = arith.constant 0 : index
      %92 = vector.load %arg9[%c0_37, %c0_38] : memref<1x1xf32, #tpu.memory_space<vmem>>, vector<1x1xf32>
      %93 = vector.shape_cast %92 : vector<1x1xf32> to vector<1x1xf32>
      %94 = vector.broadcast %93 : vector<1x1xf32> to vector<8x128xf32>
      %c0_39 = arith.constant 0 : index
      %c0_40 = arith.constant 0 : index
      %95 = vector.load %arg5[%c0_39, %c0_40] : memref<8x128xf32, #tpu.memory_space<vmem>>, vector<8x128xf32>
      tpu.vector_store %arg5[%c0_39, %c0_40], %94 {strides = array<i32>} : memref<8x128xf32, #tpu.memory_space<vmem>>, vector<8x128xf32>,
      %c0_41 = arith.constant 0 : index
      %c0_42 = arith.constant 0 : index
      %96 = vector.load %arg10[%c0_41, %c0_42] : memref<1x1xf32, #tpu.memory_space<vmem>>, vector<1x1xf32>
      %97 = vector.shape_cast %96 : vector<1x1xf32> to vector<1x1xf32>
      %98 = vector.broadcast %97 : vector<1x1xf32> to vector<8x128xf32>
      %c0_43 = arith.constant 0 : index
      %c0_44 = arith.constant 0 : index
      %99 = vector.load %arg6[%c0_43, %c0_44] : memref<8x128xf32, #tpu.memory_space<vmem>>, vector<8x128xf32>
      tpu.vector_store %arg6[%c0_43, %c0_44], %98 {strides = array<i32>} : memref<8x128xf32, #tpu.memory_space<vmem>>, vector<8x128xf32>,
      %c0_45 = arith.constant 0 : index
      %c0_46 = arith.constant 0 : index
      %100 = vector.load %arg11[%c0_45, %c0_46] : memref<1x1xf32, #tpu.memory_space<vmem>>, vector<1x1xf32>
      %101 = vector.shape_cast %100 : vector<1x1xf32> to vector<1x1xf32>
      %102 = vector.broadcast %101 : vector<1x1xf32> to vector<8x128xf32>
      %c0_47 = arith.constant 0 : index
      %c0_48 = arith.constant 0 : index
      %103 = vector.load %arg7[%c0_47, %c0_48] : memref<8x128xf32, #tpu.memory_space<vmem>>, vector<8x128xf32>
      tpu.vector_store %arg7[%c0_47, %c0_48], %102 {strides = array<i32>} : memref<8x128xf32, #tpu.memory_space<vmem>>, vector<8x128xf32>,
    } else {
    }
    return
  }
  func.func @transform_0(%arg0: i32, %arg1: i32) -> (i32, i32) {
    %c0_i32 = arith.constant 0 : i32
    %c0_i32_0 = arith.constant 0 : i32
    %c0_i32_1 = arith.constant 0 : i32
    return %c0_i32, %c0_i32_0 : i32, i32
  }
  func.func @transform_1(%arg0: i32, %arg1: i32) -> (i32, i32) {
    %c1_i32 = arith.constant 1 : i32
    %0 = arith.muli %arg0, %c1_i32 : i32
    %1 = arith.addi %0, %arg1 : i32
    %c0_i32 = arith.constant 0 : i32
    %c0_i32_0 = arith.constant 0 : i32
    return %1, %c0_i32 : i32, i32
  }
  func.func @transform_2(%arg0: i32, %arg1: i32) -> (i32, i32) {
    %c0_i32 = arith.constant 0 : i32
    %c0_i32_0 = arith.constant 0 : i32
    %c0_i32_1 = arith.constant 0 : i32
    return %c0_i32, %c0_i32_0 : i32, i32
  }
  func.func @transform_3(%arg0: i32, %arg1: i32) -> (i32, i32) {
    %c0_i32 = arith.constant 0 : i32
    %c0_i32_0 = arith.constant 0 : i32
    return %arg0, %c0_i32 : i32, i32
  }
  func.func @transform_4(%arg0: i32, %arg1: i32) -> (i32, i32) {
    %c0_i32 = arith.constant 0 : i32
    %c0_i32_0 = arith.constant 0 : i32
    return %arg0, %c0_i32 : i32, i32
  }
  func.func @transform_5(%arg0: i32, %arg1: i32) -> (i32, i32) {
    %c0_i32 = arith.constant 0 : i32
    %c0_i32_0 = arith.constant 0 : i32
    return %arg0, %c0_i32 : i32, i32
  }
}

</mosaic_0001>

<bundles_post_ra>
// kernel: tpu_custom_call.1
= control target key start
LH: loop header
LB: loop body
LE: loop exit
PB: predicated region body
PF: predicated region fallthrough
CT: control target
= control target key end

     0   :  { %11 = vsyncpa [#allocation7], 0  ;;  %s1625_s0 = inlined_call_operand.vmem [shape: f32[8,128], index: 0, kind: input, shape index: {}]   ;;  %s1626_s1 = inlined_call_operand.hbm [shape: f32[256,128], index: 1, kind: input, shape index: {}]   ;;  %s1627_s2 = inlined_call_operand.vmem [shape: s32[8,1], index: 2, kind: input, shape index: {}]   ;;  %s1628_s3 = inlined_call_operand.hbm [shape: f32[16,128], index: 3, kind: output, shape index: {0}]   ;;  %s1629_s4 = inlined_call_operand.hbm [shape: f32[16,128], index: 4, kind: output, shape index: {1}]   ;;  %s1630_s5 = inlined_call_operand.hbm [shape: f32[16,128], index: 5, kind: output, shape index: {2}]  }
   0x1   :  { %13 = vsyncpa [#allocation7 + $0x1], 0 }
   0x2   :  { %14 = vsyncpa [#allocation8], 0 }
   0x3   :  { %16 = vsyncpa [#allocation8 + $0x1], 0 }
   0x4   :  { %17 = vsyncpa [#allocation11], 0 }
   0x5   :  { %19 = vsyncpa [#allocation11 + $0x1], 0  ;;  %s1232_s18 = smov 0   ;;  %s1234_s19 = smov 0  }
   0x6   :  { %s1236_s20 = smov 0   ;;  %s1238_s21 = smov 0  }
   0x7   :  { %s1240_s22 = smov 0   ;;  %s1242_s23 = smov 0  }
   0x8 LB: > { %s1263_s24 = sadd.s32 4294967295, %s1189_s23   ;;  %s1632_s25 = sadd.s32 4294967294, %s1189_s23   ;;  %s1189_s23 = sphi %s1242_s23, %s25_s23   ;;  %s1185_s22 = sphi %s1240_s22, %s1647_s22   ;;  %s1181_s21 = sphi %s1238_s21, %s1646_s21   ;;  %s1177_s20 = sphi %s1236_s20, %s1645_s20   ;;  %s1173_s19 = sphi %s1234_s19, %s1644_s19   ;;  %s1169_s18 = sphi %s1232_s18, %s1643_s18  }
   0x9   : > { %s37_s26 = sadd.s32 1, %s1185_s22  ;;  %s67_s27 = sadd.s32 1, %s1177_s20 }
   0xa   : > { %p39_p0 = scmp.ge.s32.totalorder %s37_s26, 2  ;;  %p74_p1 = scmp.ne.s32.totalorder %s1177_s20, %s1173_s19 }
   0xb   : > { %p75_p2 = scmp.eq.s32.totalorder %s1189_s23, 0  ;;  %p80_p3 = scmp.ne.s32.totalorder %s1173_s19, %s1169_s18 }
   0xc   : > { %s1649_s26 = smov (%p39_p0, %s37_s26), 0  ;;  %p81_p5 = scmp.eq.s32.totalorder %s1263_s24, 0 }
   0xd   : > { %p1275_p4 = por %p75_p2, %p74_p1  ;;  %s64_s29 = ssub.s32 %s1185_s22, %s1649_s26 }
   0xe   : > { %p125_p6 = scmp.eq.s32.totalorder %s1263_s24, 1  ;;  %p65_p7 = scmp.eq.s32.totalorder %s64_s29, 0 }
   0xf   : > { %p1283_p8 = por %p81_p5, %p80_p3  ;;  %p131_p10 = scmp.eq.s32.totalorder %s1632_s25, 1 }
  0x10   : > { %p1287_p9 = por %p125_p6, %p74_p1  ;;  %p916_p13 = scmp.lt.s32.totalorder %s1189_s23, 2 }
  0x11   : > { %s1294_s7 = scalar_select %p65_p7, %s1177_s20, %s67_s27  }
  0x12   : > { %s1635_s6 = scalar_select %p1287_p9, 1, 0 }
  0x13   : > { %p1296_p11 = por %p131_p10, %p80_p3  ;;  %s209_s9 = sand.u32 1, %s1177_s20  }
  0x14   : > { %s792_s10 = sshll.u32 %s209_s9, 7  ;;  %s817_s11 = sshll.u32 %s1185_s22, 11 }
  0x15   : > { %s1636_s8 = scalar_select %p1296_p11, 1, 0 }
  0x16   : > { %s1307_s14 = scalar_lea.hbm %s1626_s1, %s817_s11  ;;  %s213_s15 = scalar_lea.vmem [#allocation6], %s792_s10 }
  0x17   : > { %s221_s16 = sshll.u32 %s213_s15, 4  ;;  %p1313_p0 = pnand %p916_p13, %p1275_p4  ;;  %s1309_s16 = int_to_ptr.vmem [resolvable:$true] %s221_s16 }
  0x18   : > { %s1318_s27 = scalar_lea.sflag [#allocation7], %s209_s9  ;;  %s1017_s29 = scalar_lea.hbm %s1307_s14, 2048 }
  0x19   : > { %p1018_p2 = scmp.ne.s32.totalorder %s1307_s14, %s1017_s29  ;;  %p1019_p3 = pneg %p1313_p0 }
  0x1a   : > { %s1022_s28 = scalar_lea.hbm %s1626_s1, 4096  ;;  %p1023_p4 = scmp.lt.u32.totalorder %s1307_s14, %s1626_s1 }
  0x1b   : > { %p1020_p5 = pnand %p1019_p3, %p1018_p2  ;;  %p1024_p7 = scmp.lt.u32.totalorder %s1022_s28, %s1017_s29 }
  0x1c   : > { %p1026_p13 = scmp.lt.u32.totalorder %s1017_s29, %s1307_s14 }
  0x1d   : > { %p1021_p6 = pneg %p1020_p5  ;;  %p1025_p10 = por %p1024_p7, %p1023_p4 }
  0x1f   : > { %p1027_p12 = por %p1026_p13, %p1025_p10 }
  0x21   : > { %p1028_p1 = pnand %p1027_p12, %p1021_p6 }
  0x23   : > { %1031 = shalt.err (!%p1028_p1)
}
  0x24   : > { %s1032_s9 = scalar_lea.vmem %s1309_s16, 2048  ;;  %s1191_s15 = smov [#allocation6]  }
  0x25   : > { %p1033_p2 = scmp.ne.s32.totalorder %s1309_s16, %s1032_s9  ;;  %s1037_s10 = sshll.u32 %s1191_s15, 4  ;;  %s1038_s10 = int_to_ptr.vmem [resolvable:$false] %s1037_s10 }
  0x26   : > { %s1039_s11 = scalar_lea.vmem %s1038_s10, 4096  ;;  %p1040_p9 = scmp.lt.s32.totalorder %s1309_s16, %s1038_s10 }
  0x27   : > { %p1035_p5 = pnand %p1033_p2, %p1019_p3  ;;  %p1041_p4 = scmp.lt.s32.totalorder %s1039_s11, %s1032_s9 }
  0x29   : > { %p1036_p11 = pneg %p1035_p5  ;;  %p1042_p7 = por %p1041_p4, %p1040_p9 }
  0x2b   : > { %p1043_p10 = pnand %p1042_p7, %p1036_p11 }
  0x2d   : > { %1046 = shalt.err (!%p1043_p10)
}
  0x2e   : > { %s1192_s29 = smov 128   ;;  %s1193_s28 = smov 8  }
  0x2f   : > { %905 = dma.hbm_to_vmem [thread:$0]  (!%p1313_p0), %s1307_s14, 2048, %s1309_s16, %s1318_s27, %s1192_s29, %s1192_s29, %s1193_s28  }
  0x30   : > { %p229_p12 = scmp.lt.s32.totalorder %s1189_s23, 3  ;;  %p1638_p1 = scmp.ge.s32.totalorder %s1189_s23, 1 }
  0x32   : > { %p230_p3 = pnand %p1638_p1, %p229_p12 }
  0x33   : > { %s1350_s12 = sand.u32 (!%p230_p3), 1, %s1173_s19  }
  0x34   : > { %233 = sbr.rel (%p230_p3) target bundleno = 1008 (0x3f0), region = 32  ;;  %s796_s13 = sshll.u32 (!%p230_p3), %s1350_s12, 7 }
  0x35   : > { %s236_s9 = scalar_lea.sflag (!%p230_p3), [#allocation7], %s1350_s12  ;;  %s1354_s15 = scalar_lea.vmem (!%p230_p3), [#allocation6], %s796_s13 }
  0x3b   : > { %1156 = dma.done.wait (%p1283_p8), %s236_s9, 2048  }
  0x3c   : > { %1158 = vsyncadd (%p1283_p8), %s236_s9, 4294965248  ;;  %v1361_v0 = vld [vmem:[%s1354_s15] sm:$0xff]  ;;  %v1364_v1 = vld [vmem:[%s1354_s15 + $0x10] sm:$0xff]  ;;  %v1194_v33 = vmov 0.0|0.0   ;;  %vm1195_vm0 = vmmov 0   ;;  %v1196_v35 = vmov 0.0  }
  0x3d   : > { %v1367_v2 = vld [vmem:[%s1354_s15 + $0x8] sm:$0xff]  ;;  %v312_v3 = vmul.f32 %v1361_v0, %v1361_v0  ;;  %v314_v4 = vmul.f32 %v1364_v1, %v1364_v1  ;;  %v1374_v5 = vld [vmem:[%s1354_s15 + $0x18] sm:$0xff]  ;;  %v1384_v9 = vld [vmem:[%s1354_s15 + $0x20] sm:$0xff]  ;;  %870 = vmatprep.subr.bf16.mxu0 %v1194_v33  ;;  %867 = vmatprep.mubr.msk.f32.mxu0 %vm1195_vm0, %v1196_v35  ;;  %s1453_s27 = sshll.u32 %s1181_s21, 7  ;;  %v1197_v37 = vmov 0   ;;  %vm1198_vm2 = vmmov 1  }
  0x3e   : > { %v313_v6 = vmul.f32 %v1367_v2, %v1367_v2  ;;  %v315_v7 = vmul.f32 %v1374_v5, %v1374_v5  ;;  %v1381_v8 = vld [vmem:[%s1354_s15 + $0x28] sm:$0xff]  ;;  %v316_v11 = vmul.f32 %v1384_v9, %v1384_v9  ;;  %v1391_v12 = vld [vmem:[%s1354_s15 + $0x38] sm:$0xff]  ;;  %v1394_v13 = vld [vmem:[%s1354_s15 + $0x30] sm:$0xff]  ;;  %973 = vset.pattern.permute.xlu1 %v1197_v37  ;;  %v482_v38 = vstv %s1453_s27  ;;  %974 = vset.pattern.permute.xlu0 %v1197_v37  ;;  %s500_s21 = ssub.s32 16, %s1453_s27  ;;  %s1493_s10 = sshll.u32 %s1350_s12, 3 }
  0x3f   : > { %328 = vadd.xlane.f32.xlu0 %v312_v3  ;;  %332 = vadd.xlane.f32.xlu1 %v314_v4  ;;  %v317_v10 = vmul.f32 %v1381_v8, %v1381_v8  ;;  %v319_v14 = vmul.f32 %v1391_v12, %v1391_v12  ;;  %v318_v15 = vmul.f32 %v1394_v13, %v1394_v13  ;;  %v1401_v16 = vld [vmem:[%s1354_s15 + $0x48] sm:$0xff]  ;;  %v1404_v17 = vld [vmem:[%s1354_s15 + $0x40] sm:$0xff]  ;;  %v1411_v20 = vld [vmem:[%s1354_s15 + $0x58] sm:$0xff]  ;;  %vm290_vm4 = vcmask 0   ;;  %s268_s11 = scalar_lea.vmem [#allocation10], %s1493_s10  ;;  %s603_s28 = sand.u32 1, %s1263_s24  }
  0x40   : > { %v321_v18 = vmul.f32 %v1401_v16, %v1401_v16  ;;  %v320_v19 = vmul.f32 %v1404_v17, %v1404_v17  ;;  %v1414_v21 = vld [vmem:[%s1354_s15 + $0x50] sm:$0xff]  ;;  %v323_v22 = vmul.f32 %v1411_v20, %v1411_v20  ;;  %v1421_v24 = vld [vmem:[%s1354_s15 + $0x68] sm:$0xff]  ;;  %v1424_v25 = vld [vmem:[%s1354_s15 + $0x60] sm:$0xff]  ;;  %292 = vst.msk [vmem:[#allocation4] sm:$0x1] %vm290_vm4, %v1196_v35  ;;  %s635_s29 = sshll.u32 %s268_s11, 4  ;;  %s1498_s29 = int_to_ptr.vmem [resolvable:$true] %s635_s29 }
  0x41   : > { %v322_v23 = vmul.f32 %v1414_v21, %v1414_v21  ;;  %v325_v26 = vmul.f32 %v1421_v24, %v1421_v24  ;;  %v324_v27 = vmul.f32 %v1424_v25, %v1424_v25  ;;  %v1431_v28 = vld [vmem:[%s1354_s15 + $0x78] sm:$0xff]  ;;  %v1434_v29 = vld [vmem:[%s1354_s15 + $0x70] sm:$0xff]  ;;  %291 = vst.msk [vmem:[#allocation3] sm:$0x1] %vm290_vm4, %v1196_v35  ;;  %293 = vst.msk [vmem:[#allocation5] sm:$0x1] %vm290_vm4, %v1196_v35  ;;  %s1505_s15 = scalar_lea.hbm %s1629_s4, %s1453_s27 }
  0x42   : > { %v327_v30 = vmul.f32 %v1431_v28, %v1431_v28  ;;  %v326_v31 = vmul.f32 %v1434_v29, %v1434_v29  ;;  %v1443_v32 = vld [vmem:[%s1625_s0] sm:$0xff]  ;;  %s1507_s30 = scalar_lea.sflag [#allocation11], %s603_s28  ;;  %s1047_s14 = scalar_lea.vmem %s1498_s29, 128 }
  0x43   : > { %330 = vadd.xlane.f32.xlu0 %v313_v6  ;;  %334 = vadd.xlane.f32.xlu1 %v315_v7  ;;  %v283_v34 = vmul.f32 %v1443_v32, %v1443_v32  ;;  %v311_v36 = vld [vmem:[%s1627_s2] sm:$0xff]  ;;  %p1048_p8 = scmp.ne.s32.totalorder %s1498_s29, %s1047_s14  ;;  %p1639_p9 = scmp.ne.s32.totalorder %s1635_s6, 0 }
  0x44   : > { %v483_v39 = vsub.s32 %v311_v36, %v482_v38  ;;  %s1199_s16 = smov [#allocation10]  }
  0x45   : > { %p1049_p11 = pnand %p1048_p8, %p1639_p9  ;;  %s1051_s17 = sshll.u32 %s1199_s16, 4  ;;  %s1052_s17 = int_to_ptr.vmem [resolvable:$false] %s1051_s17 }
  0x46   : > { %p1054_p6 = scmp.lt.s32.totalorder %s1498_s29, %s1052_s17 }
  0x47   : > { %338 = vadd.xlane.f32.xlu1 %v317_v10  ;;  %336 = vadd.xlane.f32.xlu0 %v316_v11  ;;  %p1050_p0 = pneg %p1049_p11 }
  0x4b   : > { %342 = vadd.xlane.f32.xlu1 %v319_v14  ;;  %340 = vadd.xlane.f32.xlu0 %v318_v15 }
  0x4f   : > { %346 = vadd.xlane.f32.xlu1 %v321_v18  ;;  %344 = vadd.xlane.f32.xlu0 %v320_v19 }
  0x53   : > { %350 = vadd.xlane.f32.xlu1 %v323_v22  ;;  %348 = vadd.xlane.f32.xlu0 %v322_v23 }
  0x57   : > { %354 = vadd.xlane.f32.xlu1 %v325_v26  ;;  %352 = vadd.xlane.f32.xlu0 %v324_v27 }
  0x5b   : > { %358 = vadd.xlane.f32.xlu1 %v327_v30  ;;  %356 = vadd.xlane.f32.xlu0 %v326_v31 }
  0x5f   : > { %284 = vadd.xlane.f32.xlu0 %v283_v34 }
  0x6c   : > { %485 = vperm.xlu1 %973, %v483_v39  }
  0xcc   : > { %v329_v40 = vpop.xlane.xlu0 %328  ;;  %v333_v41 = vpop.xlane.xlu1 %332 }
  0xcd   : > { %v360_v42 = vadd.f32 1e-12, %v329_v40  ;;  %v362_v46 = vadd.f32 1e-12, %v333_v41 }
  0xcf   : > { %975 = vrsqrt.f32 %v360_v42 }
  0xd0   : > { %v331_v43 = vpop.xlane.xlu0 %330  ;;  %v335_v44 = vpop.xlane.xlu1 %334 }
  0xd1   : > { %v361_v45 = vadd.f32 1e-12, %v331_v43  ;;  %v363_v47 = vadd.f32 1e-12, %v335_v44 }
  0xd3   : > { %977 = vrsqrt.f32 %v361_v45 }
  0xd4   : > { %v339_v48 = vpop.xlane.xlu1 %338  ;;  %979 = vrsqrt.f32 %v362_v46  ;;  %v337_v49 = vpop.xlane.xlu0 %336 }
  0xd5   : > { %981 = vrsqrt.f32 %v363_v47  ;;  %v365_v50 = vadd.f32 1e-12, %v339_v48  ;;  %v364_v51 = vadd.f32 1e-12, %v337_v49 }
  0xd7   : > { %983 = vrsqrt.f32 %v365_v50 }
  0xd8   : > { %985 = vrsqrt.f32 %v364_v51  ;;  %v343_v54 = vpop.xlane.xlu1 %342  ;;  %v341_v57 = vpop.xlane.xlu0 %340 }
  0xd9   : > { %v976_v52 = vpop.eup %975  ;;  %v367_v60 = vadd.f32 1e-12, %v343_v54  ;;  %v366_v62 = vadd.f32 1e-12, %v341_v57 }
  0xda   : > { %v392_v55 = vmul.f32 %v976_v52, %v1361_v0 }
  0xdb   : > { %987 = vrsqrt.f32 %v367_v60 }
  0xdc   : > { %989 = vrsqrt.f32 %v366_v62  ;;  %v347_v4 = vpop.xlane.xlu1 %346  ;;  %v345_v0 = vpop.xlane.xlu0 %344 }
  0xdd   : > { %v978_v53 = vpop.eup %977  ;;  %v369_v10 = vadd.f32 1e-12, %v347_v4  ;;  %v368_v11 = vadd.f32 1e-12, %v345_v0 }
  0xde   : > { %v393_v56 = vmul.f32 %v978_v53, %v1367_v2  ;;  %v980_v58 = vpop.eup %979 }
  0xdf   : > { %v982_v61 = vpop.eup %981  ;;  %v394_v63 = vmul.f32 %v980_v58, %v1364_v1  ;;  %991 = vrsqrt.f32 %v369_v10 }
  0xe0   : > { %v871_v59 = vpack.c.bf16 %v393_v56, %v392_v55  ;;  %v395_v3 = vmul.f32 %v982_v61, %v1374_v5  ;;  %993 = vrsqrt.f32 %v368_v11  ;;  %v351_v1 = vpop.xlane.xlu1 %350  ;;  %v349_v19 = vpop.xlane.xlu0 %348 }
  0xe1   : > { %v984_v6 = vpop.eup %983  ;;  %v371_v23 = vadd.f32 1e-12, %v351_v1  ;;  %v370_v26 = vadd.f32 1e-12, %v349_v19 }
  0xe2   : > { %872 = vmatpush3.bf16.xpose.msra.mxu0 %v871_v59  ;;  %v986_v7 = vpop.eup %985  ;;  %v874_v2 = vpack.c.bf16 %v395_v3, %v394_v63  ;;  %v397_v15 = vmul.f32 %v984_v6, %v1381_v8 }
  0xe3   : > { %873 = vmatprep.subr.bf16.mxu0 %v1194_v33  ;;  %v396_v14 = vmul.f32 %v986_v7, %v1384_v9  ;;  %995 = vrsqrt.f32 %v371_v23 }
  0xe4   : > { %997 = vrsqrt.f32 %v370_v26  ;;  %v355_v8 = vpop.xlane.xlu1 %354  ;;  %v353_v34 = vpop.xlane.xlu0 %352 }
  0xe5   : > { %v988_v18 = vpop.eup %987  ;;  %v877_v5 = vpack.c.bf16 %v397_v15, %v396_v14  ;;  %v373_v37 = vadd.f32 1e-12, %v355_v8  ;;  %v372_v38 = vadd.f32 1e-12, %v353_v34  ;;  %v501_v15 = vstv %s500_s21  ;;  %s1053_s21 = scalar_lea.vmem %s1052_s17, 256 }
  0xe6   : > { %v990_v22 = vpop.eup %989  ;;  %v399_v30 = vmul.f32 %v988_v18, %v1391_v12  ;;  %p1055_p13 = scmp.lt.s32.totalorder %s1053_s21, %s1047_s14 }
  0xe7   : > { %v398_v27 = vmul.f32 %v990_v22, %v1394_v13  ;;  %999 = vrsqrt.f32 %v373_v37 }
  0xe8   : > { %1001 = vrsqrt.f32 %v372_v38  ;;  %v359_v12 = vpop.xlane.xlu1 %358  ;;  %v357_v42 = vpop.xlane.xlu0 %356  ;;  %p1056_p2 = por %p1055_p13, %p1054_p6 }
  0xe9   : > { %v992_v9 = vpop.eup %991  ;;  %v880_v31 = vpack.c.bf16 %v399_v30, %v398_v27  ;;  %v375_v44 = vadd.f32 1e-12, %v359_v12  ;;  %v374_v45 = vadd.f32 1e-12, %v357_v42 }
  0xea   : > { %875 = vmatpush3.bf16.xpose.msra.mxu0 %v874_v2  ;;  %v994_v36 = vpop.eup %993  ;;  %v401_v40 = vmul.f32 %v992_v9, %v1401_v16  ;;  %p1057_p5 = pnand %p1056_p2, %p1050_p0 }
  0xeb   : > { %876 = vmatprep.subr.bf16.mxu0 %v1194_v33  ;;  %v400_v39 = vmul.f32 %v994_v36, %v1404_v17  ;;  %1003 = vrsqrt.f32 %v375_v44 }
  0xec   : > { %1005 = vrsqrt.f32 %v374_v45  ;;  %v285_v49 = vpop.xlane.xlu0 %284  ;;  %v486_v59 = vpop.permute.xlu1 %485  ;;  %v545_v45 = vld [vmem:[#allocation4] sm:$0x1] }
  0xed   : > { %v996_v13 = vpop.eup %995  ;;  %v883_v41 = vpack.c.bf16 %v401_v40, %v400_v39  ;;  %v286_v52 = vadd.f32 1e-12, %v285_v49 }
  0xee   : > { %v998_v43 = vpop.eup %997  ;;  %v403_v47 = vmul.f32 %v996_v13, %v1411_v20 }
  0xef   : > { %v402_v46 = vmul.f32 %v998_v43, %v1414_v21  ;;  %1007 = vrsqrt.f32 %v286_v52 }
  0xf1   : > { %v1000_v16 = vpop.eup %999  ;;  %v886_v17 = vpack.c.bf16 %v403_v47, %v402_v46 }
  0xf2   : > { %878 = vmatpush3.bf16.xpose.msra.mxu0 %v877_v5  ;;  %v1002_v48 = vpop.eup %1001  ;;  %v405_v51 = vmul.f32 %v1000_v16, %v1421_v24  ;;  %v480_v24 = vlaneseq }
  0xf3   : > { %879 = vmatprep.subr.bf16.mxu0 %v1194_v33  ;;  %v404_v50 = vmul.f32 %v1002_v48, %v1424_v25 }
  0xf4   : > { %v481_v58 = vand.u32 127, %v480_v24 }
  0xf5   : > { %v1004_v53 = vpop.eup %1003  ;;  %v889_v21 = vpack.c.bf16 %v405_v51, %v404_v50  ;;  %v536_v50 = vld [vmem:[#allocation3] sm:$0x1] }
  0xf6   : > { %v1006_v54 = vpop.eup %1005  ;;  %v407_v55 = vmul.f32 %v1004_v53, %v1431_v28  ;;  %vm487_vm1 = vcmp.eq.s32.totalorder %v486_v59, %v481_v58  ;;  %vm502_vm5 = vcmp.lt.s32.totalorder %v481_v58, %v501_v15  ;;  %v554_v53 = vld [vmem:[#allocation5] sm:$0x1] }
  0xf7   : > { %v406_v20 = vmul.f32 %v1006_v54, %v1434_v29  ;;  %v801_v60 = vsel %vm487_vm1, 1.0, %v1196_v35  ;;  %vm496_vm3 = vmxor %vm487_vm1, %vm1198_vm2  ;;  %v803_v18 = vsel %vm502_vm5, 1.0, %v1196_v35 }
  0xf8   : > { %v530_v34 = vrot.slane %v801_v60, 4 }
  0xf9   : > { %v892_v56 = vpack.c.bf16 %v407_v55, %v406_v20  ;;  %v1008_v57 = vpop.eup %1007 }
  0xfa   : > { %881 = vmatpush3.bf16.xpose.msra.mxu0 %v880_v31  ;;  %v288_v25 = vmul.f32 %v1008_v57, %v1443_v32  ;;  %v802_v32 = vsel %vm496_vm3, 1.0, %v1196_v35  ;;  %v531_v38 = vadd.f32 %v801_v60, %v530_v34 }
  0xfb   : > { %882 = vmatprep.subr.bf16.mxu0 %v1194_v33 }
  0xfc   : > { %v532_v12 = vrot.slane %v531_v38, 2 }
 0x102   : > { %884 = vmatpush3.bf16.xpose.msra.mxu0 %v883_v41  ;;  %v533_v41 = vadd.f32 %v532_v12, %v531_v38 }
 0x103   : > { %885 = vmatprep.subr.bf16.mxu0 %v1194_v33 }
 0x104   : > { %v534_v42 = vrot.slane %v533_v41, 1 }
 0x106   : > { %v535_v43 = vadd.f32 %v534_v42, %v533_v41 }
 0x108   : > { %vm555_vm6 = vcmp.gt.f32.partialorder %v535_v43, 0.5 }
 0x10a   : > { %887 = vmatpush3.bf16.xpose.msra.mxu0 %v886_v17  ;;  %v805_v17 = vsel %vm555_vm6, 1.0, %v1196_v35 }
 0x10b   : > { %888 = vmatprep.subr.bf16.mxu0 %v1194_v33 }
 0x112   : > { %890 = vmatpush3.bf16.xpose.msra.mxu0 %v889_v21 }
 0x113   : > { %891 = vmatprep.subr.bf16.mxu0 %v1194_v33 }
 0x11a   : > { %893 = vmatpush3.bf16.xpose.msra.mxu0 %v892_v56 }
 0x121   : > { %868 = vmatmul.mubr.f32.vlgmr.msra.gmra.mrb[0].mxu0 %v288_v25 }
 0x1f4   : > { %v474_v61 = vpop.f32.mrb[0].mxu0 }
 0x1f5   : > { %v519_v62 = vadd.f32 0.1, %v474_v61  ;;  %v869_v63 = vpop.f32.mrb[1].mxu0  ;;  %v505_v29 = vmul.f32 %v801_v60, %v474_v61 }
 0x1f7   : > { %v520_v3 = vmul.f32 32.0, %v519_v62  ;;  %506 = vadd.xlane.f32.xlu0 %v505_v29 }
 0x1f9   : > { %v521_v28 = vmul.f32 1.442695, %v520_v3 }
 0x1fb   : > { %1009 = vpow2.f32 %v521_v28 }
 0x205   : > { %v1010_v33 = vpop.eup %1009 }
 0x206   : > { %v523_v4 = vmul.f32 %v1010_v33, %v802_v32 }
 0x208   : > { %v524_v6 = vrot.slane %v523_v4, 4 }
 0x20a   : > { %v525_v0 = vadd.f32 %v524_v6, %v523_v4 }
 0x20c   : > { %v526_v7 = vrot.slane %v525_v0, 2 }
 0x20e   : > { %v527_v2 = vadd.f32 %v526_v7, %v525_v0 }
 0x210   : > { %v528_v10 = vrot.slane %v527_v2, 1 }
 0x212   : > { %v529_v11 = vadd.f32 %v528_v10, %v527_v2 }
 0x214   : > { %v546_v14 = vadd.f32 1.0, %v529_v11 }
 0x216   : > { %1011 = vlog2.f32 %v546_v14 }
 0x220   : > { %v1012_v1 = vpop.eup %1011 }
 0x221   : > { %v548_v5 = vmul.f32 0.6931472, %v1012_v1 }
 0x223   : > { %v549_v19 = vmul.f32 %v803_v18, %v548_v5 }
 0x225   : > { %550 = vadd.xlane.f32.xlu0 %v549_v19 }
 0x284   : > { %v507_v22 = vpop.xlane.xlu0 %506 }
 0x285   : > { %v804_v23 = vadd.f32 -0.1, %v507_v22 }
 0x287   : > { %v509_v26 = vmul.f32 -32.0, %v804_v23 }
 0x289   : > { %v510_v27 = vmul.f32 1.442695, %v509_v26 }
 0x28b   : > { %1013 = vpow2.f32 %v510_v27 }
 0x295   : > { %v1014_v30 = vpop.eup %1013 }
 0x296   : > { %v512_v8 = vmul.f32 %v1014_v30, %v801_v60 }
 0x298   : > { %v513_v9 = vrot.slane %v512_v8, 4 }
 0x29a   : > { %v514_v31 = vadd.f32 %v513_v9, %v512_v8 }
 0x29c   : > { %v515_v36 = vrot.slane %v514_v31, 2 }
 0x29e   : > { %v516_v37 = vadd.f32 %v515_v36, %v514_v31 }
 0x2a0   : > { %v517_v39 = vrot.slane %v516_v37, 1 }
 0x2a2   : > { %v518_v40 = vadd.f32 %v517_v39, %v516_v37 }
 0x2a4   : > { %v537_v13 = vadd.f32 1.0, %v518_v40 }
 0x2a6   : > { %1015 = vlog2.f32 %v537_v13 }
 0x2b0   : > { %v1016_v44 = vpop.eup %1015 }
 0x2b1   : > { %v539_v46 = vmul.f32 0.6931472, %v1016_v44 }
 0x2b2   : > { %v551_v47 = vpop.xlane.xlu0 %550 }
 0x2b3   : > { %v552_v16 = vadd.f32 %v551_v47, %v545_v45  ;;  %540 = vadd.xlane.f32.xlu0 %v539_v46 }
 0x2b5   : > { %553 = vst.msk [vmem:[#allocation4] sm:$0x1] %vm290_vm4, %v552_v16 }
 0x2b7   : > { %558 = vadd.xlane.f32.xlu0 %v805_v17 }
 0x2bc   : > { %v807_v48 = vld [vmem:[#allocation4] ss:$0 sm:$0xff] }
 0x2bd   : > { %583 = vperm.xlu1 %973, %v807_v48  }
 0x33c   : > { %v584_v49 = vpop.permute.xlu1 %583 }
 0x33d   : > { %586 = vst [vmem:[%s268_s11] sm:$0xff] %v584_v49 }
 0x340   : > { %v541_v51 = vpop.xlane.xlu0 %540 }
 0x341   : > { %v542_v52 = vadd.f32 %v541_v51, %v536_v50 }
 0x343   : > { %544 = vst.msk [vmem:[#allocation3] sm:$0x1] %vm290_vm4, %v542_v52 }
 0x344   : > { %v559_v21 = vpop.xlane.xlu0 %558 }
 0x345   : > { %v560_v35 = vadd.f32 %v559_v21, %v554_v53 }
 0x347   : > { %561 = vst.msk [vmem:[#allocation5] sm:$0x1] %vm290_vm4, %v560_v35 }
 0x34a   : > { %v806_v54 = vld [vmem:[#allocation3] ss:$0 sm:$0xff] }
 0x34b   : > { %572 = vperm.xlu0 %974, %v806_v54  }
 0x34e   : > { %v808_v20 = vld [vmem:[#allocation5] ss:$0 sm:$0xff] }
 0x34f   : > { %594 = vperm.xlu1 %973, %v808_v20  }
 0x350   : > { %1060 = shalt.err (!%p1057_p5)
}
 0x351   : > { %s1061_s24 = scalar_lea.hbm %s1505_s15, 128  ;;  %s1065_s13 = scalar_lea.hbm %s1629_s4, 256 }
 0x352   : > { %p1062_p4 = scmp.ne.s32.totalorder %s1505_s15, %s1061_s24  ;;  %p1066_p12 = scmp.lt.u32.totalorder %s1505_s15, %s1629_s4 }
 0x353   : > { %p1067_p1 = scmp.lt.u32.totalorder %s1065_s13, %s1061_s24  ;;  %p1069_p8 = scmp.lt.u32.totalorder %s1061_s24, %s1505_s15 }
 0x354   : > { %p1063_p7 = pnand %p1062_p4, %p1639_p9 }
 0x355   : > { %p1068_p3 = por %p1067_p1, %p1066_p12 }
 0x356   : > { %p1064_p10 = pneg %p1063_p7 }
 0x357   : > { %p1070_p11 = por %p1069_p8, %p1068_p3 }
 0x359   : > { %p1071_p0 = pnand %p1070_p11, %p1064_p10 }
 0x35b   : > { %1074 = shalt.err (!%p1071_p0)
}
 0x35c   : > { %897 = dma.vmem_to_hbm [thread:$0]  (%p1639_p9), %s1498_s29, 128, %s1505_s15, %s1507_s30  }
 0x35d   : > { %s261_s14 = scalar_lea.vmem [#allocation9], %s1493_s10  ;;  %s1538_s11 = scalar_lea.hbm %s1628_s3, %s1453_s27 }
 0x35e   : > { %s622_s17 = sshll.u32 %s261_s14, 4  ;;  %s275_s28 = scalar_lea.vmem [#allocation12], %s1493_s10  ;;  %s1532_s17 = int_to_ptr.vmem [resolvable:$true] %s622_s17 }
 0x35f   : > { %s1543_s13 = sshll.u32 %s275_s28, 4  ;;  %s599_s9 = scalar_lea.sflag [#allocation8], %s1350_s12  ;;  %s1568_s13 = int_to_ptr.vmem [resolvable:$true] %s1543_s13 }
 0x360   : > { %s1075_s29 = scalar_lea.vmem %s1532_s17, 128  ;;  %s1200_s15 = smov [#allocation9]  }
 0x361   : > { %p1076_p6 = scmp.ne.s32.totalorder %s1532_s17, %s1075_s29  ;;  %s1079_s16 = sshll.u32 %s1200_s15, 4  ;;  %s1080_s16 = int_to_ptr.vmem [resolvable:$false] %s1079_s16 }
 0x362   : > { %s1081_s21 = scalar_lea.vmem %s1080_s16, 256  ;;  %p1082_p5 = scmp.lt.s32.totalorder %s1532_s17, %s1080_s16 }
 0x363   : > { %p1077_p13 = pnand %p1076_p6, %p1639_p9  ;;  %p1083_p4 = scmp.lt.s32.totalorder %s1081_s21, %s1075_s29 }
 0x365   : > { %p1078_p2 = pneg %p1077_p13  ;;  %p1084_p7 = por %p1083_p4, %p1082_p5 }
 0x367   : > { %p1085_p10 = pnand %p1084_p7, %p1078_p2 }
 0x3ca   : > { %v573_v55 = vpop.permute.xlu0 %572 }
 0x3cb   : > { %575 = vst [vmem:[%s261_s14] sm:$0xff] %v573_v55 }
 0x3cc   : > { %1088 = shalt.err (!%p1085_p10)
}
 0x3cd   : > { %s1089_s12 = scalar_lea.hbm %s1538_s11, 128  ;;  %s1093_s15 = scalar_lea.hbm %s1628_s3, 256 }
 0x3ce   : > { %p1090_p12 = scmp.ne.s32.totalorder %s1538_s11, %s1089_s12  ;;  %p1094_p8 = scmp.lt.u32.totalorder %s1538_s11, %s1628_s3 }
 0x3cf   : > { %p1095_p11 = scmp.lt.u32.totalorder %s1093_s15, %s1089_s12  ;;  %p1097_p6 = scmp.lt.u32.totalorder %s1089_s12, %s1538_s11 }
 0x3d0   : > { %p1091_p1 = pnand %p1090_p12, %p1639_p9 }
 0x3d1   : > { %p1096_p0 = por %p1095_p11, %p1094_p8 }
 0x3d2   : > { %p1092_p3 = pneg %p1091_p1 }
 0x3d3   : > { %p1098_p13 = por %p1097_p6, %p1096_p0 }
 0x3d5   : > { %p1099_p2 = pnand %p1098_p13, %p1092_p3 }
 0x3d7   : > { %1102 = shalt.err (!%p1099_p2)
}
 0x3d8   : > { %896 = dma.vmem_to_hbm [thread:$0]  (%p1639_p9), %s1532_s17, 128, %s1538_s11, %s599_s9   ;;  %v595_v56 = vpop.permute.xlu1 %594 }
 0x3d9   : > { %s1574_s21 = scalar_lea.hbm %s1630_s5, %s1453_s27  ;;  %597 = vst [vmem:[%s275_s28] sm:$0xff] %v595_v56  ;;  %s1103_s12 = scalar_lea.vmem %s1568_s13, 128 }
 0x3da   : > { %p1104_p5 = scmp.ne.s32.totalorder %s1568_s13, %s1103_s12  ;;  %s1201_s14 = smov [#allocation12]  }
 0x3db   : > { %s1107_s17 = sshll.u32 %s1201_s14, 4  ;;  %s1108_s17 = int_to_ptr.vmem [resolvable:$false] %s1107_s17 }
 0x3dc   : > { %p1105_p4 = pnand %p1104_p5, %p1639_p9  ;;  %s1109_s11 = scalar_lea.vmem %s1108_s17, 256 }
 0x3dd   : > { %p1110_p10 = scmp.lt.s32.totalorder %s1568_s13, %s1108_s17  ;;  %p1111_p12 = scmp.lt.s32.totalorder %s1109_s11, %s1103_s12 }
 0x3de   : > { %p1106_p7 = pneg %p1105_p4 }
 0x3df   : > { %p1112_p1 = por %p1111_p12, %p1110_p10 }
 0x3e1   : > { %p1113_p3 = pnand %p1112_p1, %p1106_p7 }
 0x3e3   : > { %1116 = shalt.err (!%p1113_p3)
}
 0x3e4   : > { %s1117_s27 = scalar_lea.hbm %s1574_s21, 128  ;;  %s1121_s9 = scalar_lea.hbm %s1630_s5, 256 }
 0x3e5   : > { %p1118_p8 = scmp.ne.s32.totalorder %s1574_s21, %s1117_s27  ;;  %p1122_p6 = scmp.lt.u32.totalorder %s1574_s21, %s1630_s5 }
 0x3e6   : > { %p1123_p13 = scmp.lt.u32.totalorder %s1121_s9, %s1117_s27  ;;  %p1125_p5 = scmp.lt.u32.totalorder %s1117_s27, %s1574_s21 }
 0x3e7   : > { %p1119_p11 = pnand %p1118_p8, %p1639_p9 }
 0x3e8   : > { %p1124_p2 = por %p1123_p13, %p1122_p6 }
 0x3e9   : > { %p1120_p0 = pneg %p1119_p11 }
 0x3ea   : > { %p1126_p4 = por %p1125_p5, %p1124_p2 }
 0x3ec   : > { %p1127_p7 = pnand %p1126_p4, %p1120_p0 }
 0x3ee   : > { %1130 = shalt.err (!%p1127_p7)
}
 0x3ef   : > { %898 = dma.vmem_to_hbm [thread:$0]  (%p1639_p9), %s1568_s13, 128, %s1574_s21, %s1507_s30  }
 0x3f0 PF: > { %s660_s16 = sand.u32 1, %s1169_s18   ;;  %p1640_p10 = scmp.ne.s32.totalorder %s1636_s8, 0 }
 0x3f1   : > { %p1641_p12 = scmp.ge.s32.totalorder %s1189_s23, 2  ;;  %s661_s29 = scalar_lea.sflag [#allocation8], %s660_s16 }
 0x3f3   : > { %p907_p1 = pnand %p1641_p12, %p1640_p10 }
 0x3f5   : > { %1160 = dma.done.wait (!%p907_p1), %s661_s29, 128  }
 0x3f6   : > { %1162 = vsyncadd (!%p907_p1), %s661_s29, 4294967168  ;;  %s1642_s25 = sadd.s32 4294967294, %s1189_s23  }
 0x3f7   : > { %s669_s12 = sand.u32 1, %s1642_s25  }
 0x3f8   : > { %s670_s14 = scalar_lea.sflag [#allocation11], %s669_s12 }
 0x3f9   : > { %1164 = dma.done.wait (!%p907_p1), %s670_s14, 256  }
 0x3fa   : > { %1166 = vsyncadd (!%p907_p1), %s670_s14, 4294967040  ;;  %s25_s23 = sadd.s32 1, %s1189_s23   ;;  %s1643_s18 = smov %s1173_s19 }
 0x3fb   : > { %p22_p9 = scmp.ge.s32.totalorder %s25_s23, 4   ;;  %s1644_s19 = smov %s1177_s20 }
 0x3fc   : > { %s1645_s20 = smov %s1294_s7  ;;  %s1646_s21 = smov %s1185_s22 }
 0x3fd   : > { %s1647_s22 = smov %s1649_s26  ;;  %24 = sbr.rel (!%p22_p9) target bundleno = 8 (0x8), region = 117 }
 0x404   :  { %684 = vsyncpa [#allocation7], 1 }
 0x405   :  { %686 = vsyncpa [#allocation7 + $0x1], 1 }
 0x406   :  { %687 = vsyncpa [#allocation8], 1 }
 0x407   :  { %689 = vsyncpa [#allocation8 + $0x1], 1 }
 0x408   :  { %690 = vsyncpa [#allocation11], 1 }
 0x409   :  { %692 = vsyncpa [#allocation11 + $0x1], 1 }

</bundles_post_ra>
